<compile_context>
chip_gen: v5e
topology: v5e:2x2
jax: 0.10.0
libtpu: 0.0.40
codegen_flags: <defaults>
</compile_context>

<pallas_src>
import jax
import jax.numpy as jnp
from jax.experimental import pallas as pl
from jax.experimental.pallas import tpu as pltpu

# Double-buffered (input + output) VMEM budget used to pick the batch tile.
# Kept well under the 32 MiB scoped default (and v7x's 64 MiB physical VMEM).
_VMEM_BUDGET_BYTES = 8 * 1024 * 1024


def _shortcut_kernel(x_ref, o_ref):
    """One batch tile: out[:, pad:pad+C, i, j] = x[:, :, 2i, 2j], pads zeroed.

    x_ref: (Bt, C,     H,     W)      -- full spatial extent, NCHW
    o_ref: (Bt, C+2p,  h_out, w_out)
    """
    bt, c_in, _, w_in = x_ref.shape
    _, c_out, h_out, w_out = o_ref.shape
    pad = (c_out - c_in) // 2

    # (1) H decimation: stride-2 load on the sublane (second-minor) axis.
    y = x_ref[:, :, pl.ds(0, h_out, stride=2), :]            # (Bt, C, h_out, W)

    # (2) W decimation: one-hot selection matmul on the (otherwise idle) MXU.
    #     sel[j, k] == 1.0 iff j == 2k, so each output column is exactly one
    #     input column (plus zero terms).  HIGHEST precision keeps the f32
    #     pass-through accurate.
    row = jax.lax.broadcasted_iota(jnp.int32, (w_in, w_out), 0)
    col = jax.lax.broadcasted_iota(jnp.int32, (w_in, w_out), 1)
    sel = (row == 2 * col).astype(jnp.float32)                # (W, w_out)

    y2 = jnp.dot(
        y.astype(jnp.float32).reshape(bt * c_in * h_out, w_in),
        sel,
        precision=jax.lax.Precision.HIGHEST,
        preferred_element_type=jnp.float32,
    ).reshape(bt, c_in, h_out, w_out)

    # (3) Channel zero-pad: direct slice stores (no lane concatenate).
    if pad > 0:
        zeros = jnp.zeros((bt, pad, h_out, w_out), dtype=o_ref.dtype)
        o_ref[:, :pad, :, :] = zeros
        o_ref[:, pad + c_in:, :, :] = zeros
    o_ref[:, pad:pad + c_in, :, :] = y2.astype(o_ref.dtype)


def lambda_layer(x_nchw, planes):
    """Pallas implementation of
       lambda x: F.pad(x[:, :, ::2, ::2], (0,0,0,0, planes//4, planes//4))."""
    B, C, H, W = x_nchw.shape
    pad = planes // 4
    h_out, w_out = (H + 1) // 2, (W + 1) // 2   # ceil-div: matches x[..., ::2, ::2]
    c_out = C + 2 * pad

    # Batch tile: largest divisor of B whose double-buffered in+out blocks fit
    # the VMEM budget (portable across v5e/v6e/v7x).
    itemsize = jnp.dtype(x_nchw.dtype).itemsize
    per_image = (C * H * W + c_out * h_out * w_out) * itemsize
    bt = 1
    for d in range(1, B + 1):
        if B % d == 0 and 2 * d * per_image <= _VMEM_BUDGET_BYTES:
            bt = d
    grid = (B // bt,)

    bytes_accessed = (B * C * H * W + B * c_out * h_out * w_out) * itemsize
    flops = 2 * B * C * h_out * W * w_out       # selection matmul (MXU)

    return pl.pallas_call(
        _shortcut_kernel,
        out_shape=jax.ShapeDtypeStruct((B, c_out, h_out, w_out), x_nchw.dtype),
        grid=grid,
        in_specs=[
            pl.BlockSpec((bt, C, H, W), lambda i: (i, 0, 0, 0)),
        ],
        out_specs=pl.BlockSpec((bt, c_out, h_out, w_out), lambda i: (i, 0, 0, 0)),
        compiler_params=pltpu.CompilerParams(
            dimension_semantics=("parallel",),
            vmem_limit_bytes=32 * 1024 * 1024,
        ),
        cost_estimate=pl.CostEstimate(
            flops=flops, transcendentals=0, bytes_accessed=bytes_accessed),
    )(x_nchw)


if __name__ == "__main__":
    # Small shapes consistent with a cifar-resnet option-A shortcut:
    # in_channels=4, planes=8 (so pad=2, out_channels=8), spatial 16x16.
    key = jax.random.PRNGKey(0)
    B, C, H, W = 2, 4, 16, 16
    planes = 2 * C
    x = jax.random.normal(key, (B, C, H, W), dtype=jnp.float32)

    out = jax.block_until_ready(lambda_layer(x, planes))

    # Pure-JAX reference of the same lambda (correctness check).
    pad = planes // 4
    ref = jnp.pad(x[:, :, ::2, ::2], ((0, 0), (pad, pad), (0, 0), (0, 0)))
    assert out.shape == ref.shape, (out.shape, ref.shape)
    assert jnp.allclose(out, ref, rtol=1e-5, atol=1e-5), "mismatch vs reference"
    # The padded channels must be exactly zero.
    assert bool(jnp.all(out[:, :pad] == 0)), "leading pad channels not zero"
    assert bool(jnp.all(out[:, pad + C:] == 0)), "trailing pad channels not zero"

    print("KERNEL_OK")
</pallas_src>

<mosaic_0001>
module attributes {stable_mosaic.version = 11 : i64} {
  func.func @_shortcut_kernel(%arg0: i32, %arg1: memref<2x4x16x16xf32, #tpu.memory_space<vmem>>, %arg2: memref<2x8x8x8xf32, #tpu.memory_space<vmem>>) attributes {dimension_semantics = [#tpu.dimension_semantics<parallel>], iteration_bounds = array<i64: 1>, scalar_prefetch = 0 : i64, scratch_operands = 0 : i64, tpu.core_type = #tpu.core_type<tc>, window_params = [{transform_indices = @transform_0, window_bounds = array<i64: 2, 4, 16, 16>}, {transform_indices = @transform_1, window_bounds = array<i64: 2, 8, 8, 8>}]} {
    %c0 = arith.constant 0 : index
    %c0_0 = arith.constant 0 : index
    %c0_1 = arith.constant 0 : index
    %c0_2 = arith.constant 0 : index
    %0 = tpu.strided_load %arg1[%c0, %c0_0, %c0_1, %c0_2] {strides = array<i32: 1, 1, 2, 1>} : memref<2x4x16x16xf32, #tpu.memory_space<vmem>>, vector<2x4x8x16xf32>
    %1 = tpu.iota {dimensions = array<i32: 0>} : vector<16x8xi32>
    %2 = tpu.iota {dimensions = array<i32: 1>} : vector<16x8xi32>
    %c2_i32 = arith.constant 2 : i32
    %3 = vector.broadcast %c2_i32 : i32 to vector<16x8xi32>
    %4 = arith.muli %3, %2 : vector<16x8xi32>
    %5 = arith.cmpi eq, %1, %4 : vector<16x8xi32>
    %6 = arith.extui %5 : vector<16x8xi1> to vector<16x8xi32>
    %7 = arith.sitofp %6 : vector<16x8xi32> to vector<16x8xf32>
    %8 = vector.shape_cast %0 : vector<2x4x8x16xf32> to vector<64x16xf32>
    %cst = arith.constant dense<0.000000e+00> : vector<64x8xf32>
    %9 = tpu.matmul %8, %7, %cst {dimension_numbers = #tpu.dot_dimension_numbers<[1], [0], [0], [1], [0, 0, 1, 1], [], []>, precision = #tpu.contract_precision<fp32>} : vector<64x16xf32>, vector<16x8xf32>, vector<64x8xf32> -> vector<64x8xf32>
    %10 = vector.shape_cast %9 : vector<64x8xf32> to vector<2x4x8x8xf32>
    %cst_3 = arith.constant 0.000000e+00 : f32
    %11 = vector.broadcast %cst_3 : f32 to vector<2x2x8x8xf32>
    %c0_4 = arith.constant 0 : index
    %c0_5 = arith.constant 0 : index
    %c0_6 = arith.constant 0 : index
    %c0_7 = arith.constant 0 : index
    %12 = vector.load %arg2[%c0_4, %c0_5, %c0_6, %c0_7] : memref<2x8x8x8xf32, #tpu.memory_space<vmem>>, vector<2x2x8x8xf32>
    tpu.vector_store %arg2[%c0_4, %c0_5, %c0_6, %c0_7], %11 {strides = array<i32>} : memref<2x8x8x8xf32, #tpu.memory_space<vmem>>, vector<2x2x8x8xf32>,
    %c0_8 = arith.constant 0 : index
    %c6 = arith.constant 6 : index
    %c0_9 = arith.constant 0 : index
    %c0_10 = arith.constant 0 : index
    %13 = vector.load %arg2[%c0_8, %c6, %c0_9, %c0_10] : memref<2x8x8x8xf32, #tpu.memory_space<vmem>>, vector<2x2x8x8xf32>
    tpu.vector_store %arg2[%c0_8, %c6, %c0_9, %c0_10], %11 {strides = array<i32>} : memref<2x8x8x8xf32, #tpu.memory_space<vmem>>, vector<2x2x8x8xf32>,
    %c0_11 = arith.constant 0 : index
    %c2 = arith.constant 2 : index
    %c0_12 = arith.constant 0 : index
    %c0_13 = arith.constant 0 : index
    %14 = vector.load %arg2[%c0_11, %c2, %c0_12, %c0_13] : memref<2x8x8x8xf32, #tpu.memory_space<vmem>>, vector<2x4x8x8xf32>
    tpu.vector_store %arg2[%c0_11, %c2, %c0_12, %c0_13], %10 {strides = array<i32>} : memref<2x8x8x8xf32, #tpu.memory_space<vmem>>, vector<2x4x8x8xf32>,
    return
  }
  func.func @transform_0(%arg0: i32) -> (i32, i32, i32, i32) {
    %c0_i32 = arith.constant 0 : i32
    %c0_i32_0 = arith.constant 0 : i32
    %c0_i32_1 = arith.constant 0 : i32
    %c0_i32_2 = arith.constant 0 : i32
    return %arg0, %c0_i32, %c0_i32_0, %c0_i32_1 : i32, i32, i32, i32
  }
  func.func @transform_1(%arg0: i32) -> (i32, i32, i32, i32) {
    %c0_i32 = arith.constant 0 : i32
    %c0_i32_0 = arith.constant 0 : i32
    %c0_i32_1 = arith.constant 0 : i32
    %c0_i32_2 = arith.constant 0 : i32
    return %arg0, %c0_i32, %c0_i32_0, %c0_i32_1 : i32, i32, i32, i32
  }
}

</mosaic_0001>

<bundles_post_ra>
// kernel: tpu_custom_call.1
= control target key start
LH: loop header
LB: loop body
LE: loop exit
PB: predicated region body
PF: predicated region fallthrough
CT: control target
= control target key end

     0   :  { %6 = vsyncpa [#allocation3], 0  ;;  %s719_s0 = inlined_call_operand.hbm [shape: f32[2,4,16,16], index: 0, kind: input, shape index: {}]   ;;  %s720_s1 = inlined_call_operand.hbm [shape: f32[2,8,8,8], index: 1, kind: output, shape index: {}]  }
   0x1   :  { %7 = vsyncpa [#allocation4], 0  ;;  %s12_s8 = sshll.u32 %s719_s0, 4  ;;  %s561_s9 = smov [#allocation2]   ;;  %s13_s8 = int_to_ptr.hbm [resolvable:$true] %s12_s8 }
   0x2   :  { %s14_s10 = sshll.u32 %s561_s9, 4  ;;  %s562_s11 = smov 128   ;;  %s15_s10 = int_to_ptr.vmem [resolvable:$true] %s14_s10 }
   0x3   :  { %s563_s12 = smov 8  }
   0x4   :  { %20 = dma.hbm_to_vmem [thread:$0]  %s13_s8, 2048, %s15_s10, [#allocation3], %s562_s11, %s562_s11, %s563_s12  }
   0x5   :  { %557 = dma.done.wait [#allocation3], 2048  }
   0x6   :  { %558 = vsyncadd [#allocation3], 4294965248  ;;  %v40_v0 = vlaneseq  ;;  %vm453_vm0 = vcmask 64512   ;;  %v564_v1 = vmov 0.0   ;;  %vm52_vm1 = vcmask 130048   ;;  %s566_s0 = smov [#allocation5]  }
   0x7   :  { %454 = vst.msk [vmem:[#allocation5] sm:$0xff] %vm453_vm0, %v564_v1  ;;  %v565_v8 = vmov 1.0   ;;  %v33_v11 = vld [vmem:[#allocation2 + $0x40] ss:$2 sm:$0xff]  ;;  %v35_v15 = vld [vmem:[#allocation2 + $0x50] ss:$2 sm:$0xff] }
   0x8   :  { %v41_v2 = vshrl.u32 %v40_v0, 7  ;;  %v44_v3 = vand.u32 127, %v40_v0  ;;  %455 = vst.msk [vmem:[#allocation5 + $0x8] sm:$0xff] %vm453_vm0, %v564_v1  ;;  %v66_v14 = vsel %vm52_vm1, %v33_v11, 0  ;;  %v25_v16 = vld [vmem:[#allocation2] ss:$2 sm:$0xff] }
   0x9   :  { %456 = vst.msk [vmem:[#allocation5 + $0x40] sm:$0xff] %vm453_vm0, %v564_v1  ;;  %v613_v17 = vand.u32 4294901760, %v66_v14  ;;  %v69_v18 = vsel %vm52_vm1, %v35_v15, 0  ;;  %v54_v19 = vsel %vm52_vm1, %v25_v16, 0  ;;  %v37_v20 = vld [vmem:[#allocation2 + $0x60] ss:$2 sm:$0xff] }
   0xa   :  { %v42_v4 = vadd.s32 8, %v41_v2  ;;  %v45_v5 = vmul.u32 2, %v44_v3  ;;  %457 = vst.msk [vmem:[#allocation5 + $0x48] sm:$0xff] %vm453_vm0, %v564_v1  ;;  %v620_v23 = vand.u32 4294901760, %v69_v18  ;;  %v622_v24 = vand.u32 4294901760, %v54_v19  ;;  %s476_s13 = sshll.u32 %s566_s0, 4  ;;  %s477_s13 = int_to_ptr.vmem [resolvable:$true] %s476_s13 }
   0xb   :  { %459 = vst.msk [vmem:[#allocation5 + $0x30] sm:$0xff] %vm453_vm0, %v564_v1  ;;  %v27_v25 = vld [vmem:[#allocation2 + $0x10] ss:$2 sm:$0xff]  ;;  %v625_v26 = vsub.f32 %v66_v14, %v613_v17  ;;  %v72_v27 = vsel %vm52_vm1, %v37_v20, 0  ;;  %v29_v35 = vld [vmem:[#allocation2 + $0x20] ss:$2 sm:$0xff] }
   0xc   :  { %vm588_vm2 = vcmp.eq.s32.totalorder %v42_v4, %v45_v5  ;;  %460 = vst.msk [vmem:[#allocation5 + $0x38] sm:$0xff] %vm453_vm0, %v564_v1  ;;  %vm593_vm3 = vcmp.eq.s32.totalorder %v41_v2, %v45_v5  ;;  %v57_v28 = vsel %vm52_vm1, %v27_v25, 0  ;;  %v630_v31 = vsub.f32 %v69_v18, %v620_v23  ;;  %v39_v47 = vld [vmem:[#allocation2 + $0x70] ss:$2 sm:$0xff]  ;;  %s478_s16 = sshll.u32 %s720_s1, 4  ;;  %s479_s16 = int_to_ptr.hbm [resolvable:$true] %s478_s16 }
   0xd   :  { %499 = vmatpush.msk.msra.mxu2 %vm588_vm2, %v565_v8  ;;  %v492_v9 = vsel %vm588_vm2, 1.0, %v564_v1  ;;  %461 = vst.msk [vmem:[#allocation5 + $0x70] sm:$0xff] %vm453_vm0, %v564_v1  ;;  %v491_v10 = vsel %vm593_vm3, 1.0, %v564_v1  ;;  %493 = vmatpush.msk.msra.mxu0 %vm588_vm2, %v565_v8  ;;  %v633_v32 = vsub.f32 %v54_v19, %v622_v24  ;;  %v129_v33 = vand.u32 4294901760, %v625_v26  ;;  %v31_v50 = vld [vmem:[#allocation2 + $0x30] ss:$2 sm:$0xff] }
   0xe   :  { %v175_v12 = vsub.f32 %v492_v9, %v492_v9  ;;  %462 = vst.msk [vmem:[#allocation5 + $0x78] sm:$0xff] %vm453_vm0, %v564_v1  ;;  %v181_v13 = vsub.f32 %v491_v10, %v491_v10  ;;  %v636_v34 = vand.u32 4294901760, %v57_v28  ;;  %v137_v40 = vand.u32 4294901760, %v630_v31 }
   0xf   :  { %500 = vmatpush.msk.msra.mxu2 %vm593_vm3, %v565_v8  ;;  %494 = vmatpush.msk.msra.mxu0 %vm593_vm3, %v565_v8  ;;  %v97_v38 = vand.u32 4294901760, %v633_v32  ;;  %v130_v39 = vsub.f32 %v625_v26, %v129_v33  ;;  %v643_v41 = vand.u32 4294901760, %v72_v27  ;;  %v60_v44 = vsel %vm52_vm1, %v29_v35, 0 }
  0x10   :  { %v176_v21 = vand.u32 4294901760, %v175_v12  ;;  %v182_v22 = vand.u32 4294901760, %v181_v13  ;;  %v104_v42 = vsub.f32 %v57_v28, %v636_v34  ;;  %v111_v49 = vand.u32 4294901760, %v60_v44 }
  0x11   :  { %235 = vmatpush.msrb.mxu2 %v175_v12  ;;  %v98_v43 = vsub.f32 %v633_v32, %v97_v38  ;;  %v131_v45 = vand.u32 4294901760, %v130_v39  ;;  %v138_v51 = vsub.f32 %v630_v31, %v137_v40  ;;  %v653_v52 = vsub.f32 %v72_v27, %v643_v41 }
  0x12   :  { %v177_v29 = vsub.f32 %v175_v12, %v176_v21  ;;  %v183_v30 = vsub.f32 %v181_v13, %v182_v22  ;;  %364 = vmatpush.msrb.mxu0 %v176_v21  ;;  %v105_v46 = vand.u32 4294901760, %v104_v42  ;;  %v75_v54 = vsel %vm52_vm1, %v39_v47, 0 }
  0x13   :  { %238 = vmatpush.msrb.mxu2 %v181_v13  ;;  %v99_v48 = vand.u32 4294901760, %v98_v43  ;;  %v112_v55 = vsub.f32 %v60_v44, %v111_v49  ;;  %v63_v56 = vsel %vm52_vm1, %v31_v50, 0  ;;  %v139_v57 = vand.u32 4294901760, %v138_v51 }
  0x14   :  { %v178_v36 = vand.u32 4294901760, %v177_v29  ;;  %v184_v37 = vand.u32 4294901760, %v183_v30  ;;  %368 = vmatpush.msrb.mxu0 %v182_v22  ;;  %132 = vmatmul.f32.vlgmr.msra.gmra.mxu2 %v131_v45  ;;  %v106_v53 = vsub.f32 %v104_v42, %v105_v46  ;;  %v145_v58 = vand.u32 4294901760, %v653_v52 }
  0x15   :  { %100 = vmatmul.f32.vlgmr.msra.gmra.mxu0 %v99_v48  ;;  %v151_v59 = vand.u32 4294901760, %v75_v54  ;;  %v113_v61 = vand.u32 4294901760, %v112_v55  ;;  %v119_v62 = vand.u32 4294901760, %v63_v56 }
  0x16   :  { %501 = vmatpush.msra.mxu3 %v178_v36  ;;  %179 = vmatpush.msra.mxu1 %v178_v36  ;;  %v107_v60 = vand.u32 4294901760, %v106_v53  ;;  %v146_v63 = vsub.f32 %v653_v52, %v145_v58 }
  0x17   :  { %v152_v0 = vsub.f32 %v75_v54, %v151_v59  ;;  %v114_v1 = vsub.f32 %v112_v55, %v113_v61  ;;  %v120_v2 = vsub.f32 %v63_v56, %v119_v62 }
  0x18   :  { %502 = vmatpush.msra.mxu3 %v184_v37  ;;  %185 = vmatpush.msra.mxu1 %v184_v37  ;;  %v147_v3 = vand.u32 4294901760, %v146_v63 }
  0x19   :  { %203 = vmatmul.f32.vlgmr.msra.gmra.mxu3 %v613_v17  ;;  %187 = vmatmul.f32.vlgmr.msra.gmra.mxu1 %v622_v24  ;;  %v153_v4 = vand.u32 4294901760, %v152_v0  ;;  %v115_v5 = vand.u32 4294901760, %v114_v1  ;;  %v121_v6 = vand.u32 4294901760, %v120_v2 }
  0x1a   :  { %495 = vmatpush.msk.msrb.mxu3 %vm588_vm2, %v565_v8  ;;  %497 = vmatpush.msk.msrb.mxu1 %vm588_vm2, %v565_v8 }
  0x1b   :  { %v154_v7 = vsub.f32 %v152_v0, %v153_v4 }
  0x1c   :  { %496 = vmatpush.msk.msrb.mxu3 %vm593_vm3, %v565_v8  ;;  %498 = vmatpush.msk.msrb.mxu1 %vm593_vm3, %v565_v8  ;;  %v122_v8 = vsub.f32 %v120_v2, %v121_v6 }
  0x1d   :  { %140 = vmatmul.f32.gmra.mxu2 %v139_v57  ;;  %108 = vmatmul.f32.gmra.mxu0 %v107_v60  ;;  %v155_v9 = vand.u32 4294901760, %v154_v7 }
  0x1e   :  { %v123_v10 = vand.u32 4294901760, %v122_v8 }
  0x21   :  { %207 = vmatmul.f32.gmra.mxu3 %v620_v23  ;;  %191 = vmatmul.f32.gmra.mxu1 %v636_v34 }
  0x25   :  { %148 = vmatmul.f32.gmra.mxu2 %v147_v3  ;;  %116 = vmatmul.f32.gmra.mxu0 %v115_v5 }
  0x29   :  { %211 = vmatmul.f32.gmra.mxu3 %v643_v41  ;;  %195 = vmatmul.f32.gmra.mxu1 %v111_v49 }
  0x2d   :  { %156 = vmatmul.f32.gmra.mxu2 %v155_v9  ;;  %124 = vmatmul.f32.gmra.mxu0 %v123_v10 }
  0x31   :  { %215 = vmatmul.f32.gmra.mxu3 %v151_v59  ;;  %199 = vmatmul.f32.gmra.mxu1 %v119_v62 }
  0x35   :  { %241 = vmatmul.f32.vlgmr.msrb.gmra.mxu2 %v633_v32  ;;  %370 = vmatmul.f32.vlgmr.msrb.gmra.mxu0 %v622_v24 }
  0x39   :  { %301 = vmatmul.f32.vlgmr.msrb.gmra.mxu3 %v97_v38  ;;  %421 = vmatmul.f32.vlgmr.msrb.gmra.mxu1 %v622_v24 }
  0x3d   :  { %246 = vmatmul.f32.gmra.mxu2 %v104_v42  ;;  %374 = vmatmul.f32.gmra.mxu0 %v636_v34 }
  0x41   :  { %307 = vmatmul.f32.gmra.mxu3 %v105_v46  ;;  %425 = vmatmul.f32.gmra.mxu1 %v636_v34 }
  0x45   :  { %251 = vmatmul.f32.gmra.mxu2 %v112_v55  ;;  %378 = vmatmul.f32.gmra.mxu0 %v111_v49 }
  0x49   :  { %313 = vmatmul.f32.gmra.mxu3 %v113_v61  ;;  %429 = vmatmul.f32.gmra.mxu1 %v111_v49 }
  0x4d   :  { %256 = vmatmul.f32.gmra.mxu2 %v120_v2  ;;  %382 = vmatmul.f32.gmra.mxu0 %v119_v62 }
  0x51   :  { %319 = vmatmul.f32.gmra.mxu3 %v121_v6  ;;  %433 = vmatmul.f32.gmra.mxu1 %v119_v62 }
  0x55   :  { %261 = vmatmul.f32.gmra.mxu2 %v625_v26  ;;  %386 = vmatmul.f32.gmra.mxu0 %v613_v17 }
  0x59   :  { %325 = vmatmul.f32.gmra.mxu3 %v129_v33  ;;  %437 = vmatmul.f32.gmra.mxu1 %v613_v17 }
  0x5d   :  { %266 = vmatmul.f32.gmra.mxu2 %v630_v31  ;;  %390 = vmatmul.f32.gmra.mxu0 %v620_v23 }
  0x61   :  { %331 = vmatmul.f32.gmra.mxu3 %v137_v40  ;;  %441 = vmatmul.f32.gmra.mxu1 %v620_v23 }
  0x65   :  { %271 = vmatmul.f32.gmra.mxu2 %v653_v52  ;;  %394 = vmatmul.f32.gmra.mxu0 %v643_v41 }
  0x69   :  { %337 = vmatmul.f32.gmra.mxu3 %v145_v58  ;;  %445 = vmatmul.f32.gmra.mxu1 %v643_v41 }
  0x6d   :  { %276 = vmatmul.f32.gmra.mxu2 %v152_v0  ;;  %398 = vmatmul.f32.gmra.mxu0 %v151_v59 }
  0x71   :  { %343 = vmatmul.f32.gmra.mxu3 %v153_v4  ;;  %449 = vmatmul.f32.gmra.mxu1 %v151_v59 }
  0x92   :  { %v101_v11 = vpop.f32.mrf.mxu0 }
  0x96   :  { %v188_v12 = vpop.f32.mrf.mxu1 }
  0x97   :  { %v133_v13 = vpop.f32.mrf.mxu2  ;;  %v189_v29 = vadd.f32 %v188_v12, %v101_v11 }
  0x9a   :  { %v109_v15 = vpop.f32.mrf.mxu0 }
  0x9c   :  { %v204_v14 = vpop.f32.mrf.mxu3 }
  0x9d   :  { %v205_v0 = vadd.f32 %v204_v14, %v133_v13 }
  0x9e   :  { %v192_v16 = vpop.f32.mrf.mxu1 }
  0x9f   :  { %v193_v37 = vadd.f32 %v192_v16, %v109_v15 }
  0xa0   :  { %v141_v17 = vpop.f32.mrf.mxu2 }
  0xa2   :  { %v117_v19 = vpop.f32.mrf.mxu0 }
  0xa4   :  { %v208_v18 = vpop.f32.mrf.mxu3 }
  0xa5   :  { %v209_v8 = vadd.f32 %v208_v18, %v141_v17 }
  0xa6   :  { %v196_v20 = vpop.f32.mrf.mxu1 }
  0xa7   :  { %v197_v46 = vadd.f32 %v196_v20, %v117_v19 }
  0xa8   :  { %v693_v21 = vpop.f32.mrf.mxu2 }
  0xaa   :  { %v125_v23 = vpop.f32.mrf.mxu0 }
  0xac   :  { %v695_v22 = vpop.f32.mrf.mxu3 }
  0xad   :  { %v213_v13 = vadd.f32 %v695_v22, %v693_v21 }
  0xae   :  { %v200_v24 = vpop.f32.mrf.mxu1 }
  0xaf   :  { %v201_v55 = vadd.f32 %v200_v24, %v125_v23 }
  0xb0   :  { %v697_v25 = vpop.f32.mrf.mxu2 }
  0xb2   :  { %v371_v27 = vpop.f32.mrf.mxu0 }
  0xb4   :  { %v699_v26 = vpop.f32.mrf.mxu3 }
  0xb6   :  { %v422_v28 = vpop.f32.mrf.mxu1 }
  0xb8   :  { %v242_v30 = vpop.f32.mrf.mxu2 }
  0xb9   :  { %v243_v32 = vadd.f32 %v242_v30, %v189_v29  ;;  %v217_v29 = vadd.f32 %v699_v26, %v697_v25 }
  0xba   :  { %v375_v34 = vpop.f32.mrf.mxu0 }
  0xbc   :  { %v302_v31 = vpop.f32.mrf.mxu3 }
  0xbd   :  { %v303_v33 = vadd.f32 %v302_v31, %v243_v32 }
  0xbe   :  { %v426_v35 = vpop.f32.mrf.mxu1 }
  0xbf   :  { %v372_v36 = vadd.f32 %v371_v27, %v303_v33 }
  0xc0   :  { %v247_v39 = vpop.f32.mrf.mxu2 }
  0xc1   :  { %v423_v38 = vadd.f32 %v422_v28, %v372_v36  ;;  %v248_v41 = vadd.f32 %v247_v39, %v193_v37 }
  0xc2   :  { %v379_v43 = vpop.f32.mrf.mxu0 }
  0xc3   :  { %464 = vst.msk [vmem:[#allocation5 + $0x10] sm:$0xff] %vm453_vm0, %v423_v38 }
  0xc4   :  { %v308_v40 = vpop.f32.mrf.mxu3 }
  0xc5   :  { %v309_v42 = vadd.f32 %v308_v40, %v248_v41 }
  0xc6   :  { %v430_v44 = vpop.f32.mrf.mxu1 }
  0xc7   :  { %v376_v45 = vadd.f32 %v375_v34, %v309_v42 }
  0xc8   :  { %v252_v48 = vpop.f32.mrf.mxu2 }
  0xc9   :  { %v427_v47 = vadd.f32 %v426_v35, %v376_v45  ;;  %v253_v50 = vadd.f32 %v252_v48, %v197_v46 }
  0xca   :  { %v383_v52 = vpop.f32.mrf.mxu0 }
  0xcb   :  { %465 = vst.msk [vmem:[#allocation5 + $0x18] sm:$0xff] %vm453_vm0, %v427_v47 }
  0xcc   :  { %v314_v49 = vpop.f32.mrf.mxu3 }
  0xcd   :  { %v315_v51 = vadd.f32 %v314_v49, %v253_v50 }
  0xce   :  { %v434_v53 = vpop.f32.mrf.mxu1 }
  0xcf   :  { %v380_v54 = vadd.f32 %v379_v43, %v315_v51 }
  0xd0   :  { %v257_v57 = vpop.f32.mrf.mxu2 }
  0xd1   :  { %v431_v56 = vadd.f32 %v430_v44, %v380_v54  ;;  %v258_v59 = vadd.f32 %v257_v57, %v201_v55 }
  0xd2   :  { %v387_v61 = vpop.f32.mrf.mxu0 }
  0xd3   :  { %466 = vst.msk [vmem:[#allocation5 + $0x20] sm:$0xff] %vm453_vm0, %v431_v56 }
  0xd4   :  { %v320_v58 = vpop.f32.mrf.mxu3 }
  0xd5   :  { %v321_v60 = vadd.f32 %v320_v58, %v258_v59 }
  0xd6   :  { %v438_v63 = vpop.f32.mrf.mxu1 }
  0xd7   :  { %v384_v62 = vadd.f32 %v383_v52, %v321_v60 }
  0xd8   :  { %v262_v2 = vpop.f32.mrf.mxu2 }
  0xd9   :  { %v435_v1 = vadd.f32 %v434_v53, %v384_v62  ;;  %v263_v4 = vadd.f32 %v262_v2, %v205_v0 }
  0xda   :  { %v391_v7 = vpop.f32.mrf.mxu0 }
  0xdb   :  { %467 = vst.msk [vmem:[#allocation5 + $0x28] sm:$0xff] %vm453_vm0, %v435_v1 }
  0xdc   :  { %v326_v3 = vpop.f32.mrf.mxu3 }
  0xdd   :  { %v327_v5 = vadd.f32 %v326_v3, %v263_v4 }
  0xde   :  { %v442_v10 = vpop.f32.mrf.mxu1 }
  0xdf   :  { %v388_v6 = vadd.f32 %v387_v61, %v327_v5 }
  0xe0   :  { %v267_v11 = vpop.f32.mrf.mxu2 }
  0xe1   :  { %v439_v9 = vadd.f32 %v438_v63, %v388_v6  ;;  %v268_v15 = vadd.f32 %v267_v11, %v209_v8 }
  0xe2   :  { %v395_v20 = vpop.f32.mrf.mxu0 }
  0xe3   :  { %468 = vst.msk [vmem:[#allocation5 + $0x50] sm:$0xff] %vm453_vm0, %v439_v9 }
  0xe4   :  { %v332_v12 = vpop.f32.mrf.mxu3 }
  0xe5   :  { %v333_v16 = vadd.f32 %v332_v12, %v268_v15 }
  0xe6   :  { %v446_v17 = vpop.f32.mrf.mxu1 }
  0xe7   :  { %v392_v19 = vadd.f32 %v391_v7, %v333_v16 }
  0xe8   :  { %v272_v23 = vpop.f32.mrf.mxu2 }
  0xe9   :  { %v443_v14 = vadd.f32 %v442_v10, %v392_v19  ;;  %v273_v27 = vadd.f32 %v272_v23, %v213_v13 }
  0xea   :  { %v399_v21 = vpop.f32.mrf.mxu0 }
  0xeb   :  { %469 = vst.msk [vmem:[#allocation5 + $0x58] sm:$0xff] %vm453_vm0, %v443_v14 }
  0xec   :  { %v338_v24 = vpop.f32.mrf.mxu3 }
  0xed   :  { %v339_v18 = vadd.f32 %v338_v24, %v273_v27 }
  0xee   :  { %v450_v34 = vpop.f32.mrf.mxu1 }
  0xef   :  { %v396_v28 = vadd.f32 %v395_v20, %v339_v18 }
  0xf0   :  { %v277_v31 = vpop.f32.mrf.mxu2 }
  0xf1   :  { %v447_v30 = vadd.f32 %v446_v17, %v396_v28  ;;  %v278_v33 = vadd.f32 %v277_v31, %v217_v29 }
  0xf3   :  { %470 = vst.msk [vmem:[#allocation5 + $0x60] sm:$0xff] %vm453_vm0, %v447_v30 }
  0xf4   :  { %v344_v32 = vpop.f32.mrf.mxu3 }
  0xf5   :  { %v345_v22 = vadd.f32 %v344_v32, %v278_v33 }
  0xf7   :  { %v400_v35 = vadd.f32 %v399_v21, %v345_v22 }
  0xf9   :  { %v451_v36 = vadd.f32 %v450_v34, %v400_v35 }
  0xfb   :  { %471 = vst.msk [vmem:[#allocation5 + $0x68] sm:$0xff] %vm453_vm0, %v451_v36 }
  0xfc   :  { %484 = dma.vmem_to_hbm [thread:$0]  %s477_s13, 2048, %s479_s16, [#allocation4], %s562_s11, %s562_s11, %s563_s12  }
  0xfd   :  { %559 = dma.done.wait [#allocation4], 2048  }
  0xfe   :  { %560 = vsyncadd [#allocation4], 4294965248 }
  0xff   :  { %489 = vsyncpa [#allocation3], 1 }
 0x100   :  { %490 = vsyncpa [#allocation4], 1 }

</bundles_post_ra>
